<compile_context>
chip_gen: v5e
topology: v5e:2x2
jax: 0.10.0
libtpu: 0.0.40
codegen_flags: <defaults>
</compile_context>

<pallas_src>
import jax
import jax.numpy as jnp
from jax import lax
from jax.experimental import pallas as pl
from jax.experimental.pallas import tpu as pltpu


_MAX_TILE_V = 2048          # columns of `symbols` kept resident per grid step
_VMEM_SOFT_CAP = 40 << 20   # shrink row tiles above this estimated footprint
_VMEM_HARD_CAP = 48 << 20   # ~75% of v7x's 64 MiB physical VMEM (safe on all gens)


def _round_up(x, m):
    return ((x + m - 1) // m) * m


def _v_tiling(voc_dim):
    v128 = _round_up(voc_dim, 128)
    tile_v = min(v128, _MAX_TILE_V)
    v_pad = _round_up(v128, tile_v)
    return tile_v, v_pad


def _vmem_bytes(tile_bt, s_pad, tile_v):
    # double-buffered: z_logits f32, gumbel f32, symbols bf16, logits bf16, z_post bf16
    return 2 * (4 * tile_bt * s_pad          # z_logits
                + 4 * tile_bt * s_pad        # gumbel
                + 2 * s_pad * tile_v         # symbols
                + 2 * tile_bt * tile_v       # logits out
                + 2 * tile_bt * s_pad)       # z_post out


# ----------------------------------------------------------------------------
# Kernel: hard one-hot of argmax(z_logits + gumbel) + MXU projection with symbols.
# hard=True forward value == one-hot(argmax(z_logits + gumbel)); the softmax /
# tau division is skipped entirely (argmax is invariant to the positive 1/tau scale).
# ----------------------------------------------------------------------------
def _narrnn_kernel(zlogits_ref, gumbel_ref, symbols_ref, logits_ref, zpost_ref):
    s = zlogits_ref[...] + gumbel_ref[...]                     # [tile_bt, S_pad] f32
    n = s.shape[-1]
    col = lax.broadcasted_iota(jnp.int32, s.shape, 1)          # [tile_bt, S_pad]
    max_val = jnp.max(s, axis=-1, keepdims=True)               # XLU reduce
    # first-occurrence argmax (deterministic tie-break), one more XLU reduce
    argmax_idx = jnp.min(jnp.where(s == max_val, col, jnp.int32(n)),
                         axis=-1, keepdims=True)
    z_hard = (col == argmax_idx).astype(jnp.bfloat16)          # lossless {0,1} in bf16

    zpost_ref[...] = z_hard                                    # bf16 store (half the bytes)
    logits_ref[...] = jnp.dot(z_hard, symbols_ref[...],
                              preferred_element_type=jnp.float32
                              ).astype(logits_ref.dtype)


# ----------------------------------------------------------------------------
# Wrapper: lane-dense tiling, 2-D grid (row tiles x vocab tiles), pallas_call.
# ----------------------------------------------------------------------------
def narrnn_sample_and_project(z_logits, symbols_padded, *, n_symbols, voc_dim,
                              key=None, gumbel=None, tile_bt=1024):
    """z_logits: [BT, S_pad] f32 (lane-dense; pad cols already carry ~-1e30 bias);
    symbols_padded: [S_pad, V_pad] bf16 (pre-padded, from make_params).

    Returns (logits [BT, voc_dim] bf16, z_post [BT, n_symbols] bf16 hard one-hots).
    Pass `gumbel` explicitly for the bit-check path; otherwise `key` is used to
    draw Gumbel noise at the padded shape.
    """
    BT = z_logits.shape[0]
    S_pad, V_pad = symbols_padded.shape
    tile_v = V_pad if V_pad <= _MAX_TILE_V else _MAX_TILE_V
    assert V_pad % tile_v == 0

    # Fallback column pad (normally the encoder already emits lane-dense S_pad).
    if z_logits.shape[1] != S_pad:
        zl = jnp.full((BT, S_pad), -1e30, jnp.float32)
        zl = zl.at[:, :z_logits.shape[1]].set(z_logits.astype(jnp.float32))
    else:
        zl = z_logits.astype(jnp.float32)

    # ---- row tiling -------------------------------------------------------
    BT8 = _round_up(max(BT, 1), 8)
    tile_bt = min(tile_bt, BT8)
    if BT8 >= 16:  # keep >= 2 row tiles so both v7x TensorCores get work
        tile_bt = min(tile_bt, _round_up(pl.cdiv(BT8, 2), 8))
    tile_bt = max(8, (tile_bt // 8) * 8)
    while _vmem_bytes(tile_bt, S_pad, tile_v) > _VMEM_SOFT_CAP and tile_bt > 8:
        tile_bt = max(8, (tile_bt // 2 // 8) * 8)
    BT_pad = _round_up(BT, tile_bt)
    grid = (BT_pad // tile_bt, V_pad // tile_v)

    if BT_pad != BT:
        zl = jnp.pad(zl, ((0, BT_pad - BT), (0, 0)))

    if gumbel is not None:
        # debug / bit-check path: externally supplied noise
        g = jnp.zeros((BT_pad, S_pad), jnp.float32)
        g = g.at[:BT, :gumbel.shape[1]].set(gumbel.astype(jnp.float32))
    else:
        # Generated directly at the padded, lane-dense shape (no pad copy).
        # TODO(synk): move to pltpu.prng_seed/prng_random_bits inside the kernel
        # once the runtime supports it (removes this HBM round-trip).
        g = jax.random.gumbel(key, (BT_pad, S_pad), jnp.float32)

    out_shape = (
        jax.ShapeDtypeStruct((BT_pad, V_pad), jnp.bfloat16),   # logits
        jax.ShapeDtypeStruct((BT_pad, S_pad), jnp.bfloat16),   # z_post
    )

    cost = pl.CostEstimate(
        flops=2 * BT_pad * S_pad * V_pad,
        transcendentals=0,
        bytes_accessed=(8 * BT_pad * S_pad            # z_logits + gumbel reads (f32)
                        + 2 * S_pad * V_pad           # symbols read (bf16)
                        + 2 * BT_pad * (S_pad + V_pad)))  # bf16 writes

    vmem_limit = int(max(16 << 20,
                         min(_VMEM_HARD_CAP,
                             int(1.25 * _vmem_bytes(tile_bt, S_pad, tile_v)) + (2 << 20))))

    gs = pltpu.PrefetchScalarGridSpec(
        num_scalar_prefetch=0, grid=grid,
        in_specs=[
            pl.BlockSpec((tile_bt, S_pad), lambda i, j: (i, 0)),   # z_logits (reused over j)
            pl.BlockSpec((tile_bt, S_pad), lambda i, j: (i, 0)),   # gumbel   (reused over j)
            pl.BlockSpec((S_pad, tile_v), lambda i, j: (0, j)),    # symbols column tile
        ],
        out_specs=(
            pl.BlockSpec((tile_bt, tile_v), lambda i, j: (i, j)),  # logits
            pl.BlockSpec((tile_bt, S_pad), lambda i, j: (i, 0)),   # z_post (revisited over j)
        ))

    logits_pad, zpost_pad = pl.pallas_call(
        _narrnn_kernel, out_shape=out_shape, grid_spec=gs,
        compiler_params=pltpu.CompilerParams(
            dimension_semantics=("parallel", "arbitrary"),
            vmem_limit_bytes=vmem_limit),
        cost_estimate=cost,
    )(zl, g, symbols_padded)

    return logits_pad[:BT, :voc_dim], zpost_pad[:BT, :n_symbols]


# ----------------------------------------------------------------------------
# Encoder glue (embedding + simple tanh RNN + projection to schema logits).
# TODO(synk): the concrete encoder class comes from create_instance('encoder', ...)
# and is not part of the given module source; a minimal recurrent encoder is used.
# ----------------------------------------------------------------------------
def encoder_logits(params, input_seq):
    """input_seq: [B, T] int32 -> lane-dense schema logits [B*T, S_pad]
    (pad columns carry a -1e30 bias so the kernel's argmax never selects them)."""
    emb = params["W_emb"][input_seq]                           # [B, T, E]
    B, T, E = emb.shape
    H = params["W_hh"].shape[0]

    # Hoisted input projection: one [B*T, E] @ [E, H] matmul instead of T tiny ones.
    x_proj = (emb.reshape(B * T, E) @ params["W_ih"] + params["b_h"]).reshape(B, T, H)

    def step(h, x_t):
        h_new = jnp.tanh(x_t + h @ params["W_hh"])
        return h_new, h_new

    _, hs = lax.scan(step, jnp.zeros((B, H), jnp.float32), jnp.swapaxes(x_proj, 0, 1))
    hs = jnp.swapaxes(hs, 0, 1).reshape(B * T, H)              # [B*T, H]
    return hs @ params["W_out"] + params["b_out"]              # [B*T, S_pad]


def narrnn_forward(params, y, tau, key):
    """Mirrors NARRNN.forward: y = (input_seq [B,T], seq_len [B]).

    With hard=True the forward output is tau-invariant (one-hot of the argmax of
    the Gumbel-perturbed logits), so tau is accepted for API parity but unused.
    Outputs are bf16 (exact for {0,1} one-hots and 0/0.5 symbol rows).
    """
    del tau
    input_seq, _seq_len = y
    B, T = input_seq.shape
    n_symbols, voc_dim = params["n_symbols"], params["voc_dim"]

    z_logits = encoder_logits(params, input_seq)               # [B*T, S_pad]
    logits, z_post_flat = narrnn_sample_and_project(
        z_logits, params["symbols_padded"],
        n_symbols=n_symbols, voc_dim=voc_dim, key=key)
    return logits, z_post_flat.reshape(B, T, n_symbols)        # ([B*T, V], [B, T, S])


# ----------------------------------------------------------------------------
# Deterministic parameter construction
# ----------------------------------------------------------------------------
def make_params(key, voc_dim, emb_dim, hidden_dim, n_symbols):
    ks = jax.random.split(key, 4)
    S_pad = _round_up(n_symbols, 128)
    _, V_pad = _v_tiling(voc_dim)

    # W_out / b_out pre-padded to S_pad so the encoder emits lane-dense logits;
    # pad columns get a -1e30 bias (argmax can never select them).
    W_out = jnp.zeros((hidden_dim, S_pad), jnp.float32)
    W_out = W_out.at[:, :n_symbols].set(
        0.1 * jax.random.normal(ks[3], (hidden_dim, n_symbols), jnp.float32))
    b_out = jnp.full((S_pad,), -1e30, jnp.float32).at[:n_symbols].set(0.0)

    # symbols: zeros with 0.5 at two (deterministic) word indices per schema,
    # mimicking the schema_words initialization in NARRNN.__init__.
    symbols = jnp.zeros((n_symbols, voc_dim), jnp.float32)
    rows = jnp.arange(n_symbols)
    symbols = symbols.at[rows, (2 * rows) % voc_dim].set(0.5)
    symbols = symbols.at[rows, (2 * rows + 1) % voc_dim].set(0.5)

    # Pre-padded bf16 copy, hoisted out of the per-forward wrapper.
    # NOTE: lossless for the 0/0.5 init; revisit if `symbols` ever becomes trainable.
    symbols_padded = jnp.zeros((S_pad, V_pad), jnp.bfloat16)
    symbols_padded = symbols_padded.at[:n_symbols, :voc_dim].set(
        symbols.astype(jnp.bfloat16))

    return {
        "W_emb": 0.1 * jax.random.normal(ks[0], (voc_dim, emb_dim), jnp.float32),
        "W_ih": 0.1 * jax.random.normal(ks[1], (emb_dim, hidden_dim), jnp.float32),
        "W_hh": 0.1 * jax.random.normal(ks[2], (hidden_dim, hidden_dim), jnp.float32),
        "b_h": jnp.zeros((hidden_dim,), jnp.float32),
        "W_out": W_out,
        "b_out": b_out,
        "symbols": symbols,
        "symbols_padded": symbols_padded,
        "n_symbols": n_symbols,
        "voc_dim": voc_dim,
    }


# ----------------------------------------------------------------------------
# Pure-JAX reference (for correctness check of the kernel path)
# ----------------------------------------------------------------------------
def reference_sample_and_project(z_logits, gumbel, symbols, tau):
    s = (z_logits + gumbel) / tau
    y_soft = jax.nn.softmax(s, axis=-1)
    idx = jnp.argmax(y_soft, axis=-1)
    z_hard = jax.nn.one_hot(idx, z_logits.shape[-1], dtype=jnp.float32)
    return z_hard @ symbols, z_hard


if __name__ == "__main__":
    # Small shapes consistent with the module: B batch, T=fix_len, V=voc_dim,
    # S=n_symbols, E=emb_dim.
    B, T = 2, 8
    voc_dim, n_symbols, emb_dim, hidden_dim = 32, 16, 32, 32
    tau = jnp.float32(0.5)

    root = jax.random.PRNGKey(0)
    k_param, k_data, k_noise = jax.random.split(root, 3)

    params = make_params(k_param, voc_dim, emb_dim, hidden_dim, n_symbols)
    input_seq = jax.random.randint(k_data, (B, T), 0, voc_dim, dtype=jnp.int32)
    seq_len = jnp.full((B,), T, dtype=jnp.float32)

    # ---- production path -----------------------------------------------------
    logits, z_post = narrnn_forward(params, (input_seq, seq_len), tau, k_noise)
    logits = jax.block_until_ready(logits)
    z_post = jax.block_until_ready(z_post)

    assert logits.shape == (B * T, voc_dim)
    assert z_post.shape == (B, T, n_symbols)

    zp = z_post.reshape(B * T, n_symbols).astype(jnp.float32)
    assert bool(jnp.all((zp == 0.0) | (zp == 1.0)))            # hard one-hots
    assert bool(jnp.all(jnp.sum(zp, axis=-1) == 1.0))          # exactly one hot
    assert jnp.allclose(logits.astype(jnp.float32), zp @ params["symbols"], atol=1e-5)

    # determinism: same key -> same gumbel noise -> identical outputs
    logits2, z_post2 = narrnn_forward(params, (input_seq, seq_len), tau, k_noise)
    logits2 = jax.block_until_ready(logits2)
    z_post2 = jax.block_until_ready(z_post2)
    assert bool(jnp.array_equal(z_post, z_post2))
    assert bool(jnp.array_equal(logits, logits2))

    # ---- bit-exact check of argmax/one-hot/matmul path vs pure-JAX ref --------
    z_logits = encoder_logits(params, input_seq)               # [B*T, S_pad]
    u = jax.random.uniform(k_noise, (B * T, n_symbols), jnp.float32,
                           minval=1e-6, maxval=1.0 - 1e-6)
    gumbel = -jnp.log(-jnp.log(u))
    k_logits, k_z = narrnn_sample_and_project(
        z_logits, params["symbols_padded"],
        n_symbols=n_symbols, voc_dim=voc_dim, gumbel=gumbel)
    ref_logits, ref_z = reference_sample_and_project(
        z_logits[:, :n_symbols], gumbel, params["symbols"], tau)
    assert jnp.allclose(k_logits.astype(jnp.float32), ref_logits, atol=1e-5)
    assert jnp.allclose(k_z.astype(jnp.float32), ref_z, atol=1e-5)

    print("KERNEL_OK")
</pallas_src>

<mosaic_0001>
module attributes {stable_mosaic.version = 11 : i64} {
  func.func @_narrnn_kernel(%arg0: i32, %arg1: i32, %arg2: memref<8x128xf32, #tpu.memory_space<vmem>>, %arg3: memref<8x128xf32, #tpu.memory_space<vmem>>, %arg4: memref<128x128xbf16, #tpu.memory_space<vmem>>, %arg5: memref<8x128xbf16, #tpu.memory_space<vmem>>, %arg6: memref<8x128xbf16, #tpu.memory_space<vmem>>) attributes {dimension_semantics = [#tpu.dimension_semantics<parallel>, #tpu.dimension_semantics<arbitrary>], iteration_bounds = array<i64: 2, 1>, scalar_prefetch = 0 : i64, scratch_operands = 0 : i64, tpu.core_type = #tpu.core_type<tc>, window_params = [{transform_indices = @transform_0, window_bounds = array<i64: 8, 128>}, {transform_indices = @transform_1, window_bounds = array<i64: 8, 128>}, {transform_indices = @transform_2, window_bounds = array<i64: 128, 128>}, {transform_indices = @transform_3, window_bounds = array<i64: 8, 128>}, {transform_indices = @transform_4, window_bounds = array<i64: 8, 128>}]} {
    %c0 = arith.constant 0 : index
    %c0_0 = arith.constant 0 : index
    %0 = vector.load %arg2[%c0, %c0_0] : memref<8x128xf32, #tpu.memory_space<vmem>>, vector<8x128xf32>
    %c0_1 = arith.constant 0 : index
    %c0_2 = arith.constant 0 : index
    %1 = vector.load %arg3[%c0_1, %c0_2] : memref<8x128xf32, #tpu.memory_space<vmem>>, vector<8x128xf32>
    %2 = arith.addf %0, %1 : vector<8x128xf32>
    %3 = tpu.iota {dimensions = array<i32: 1>} : vector<8x128xi32>
    %cst = arith.constant dense<0xFF800000> : vector<8xf32>
    %4 = vector.multi_reduction <maximumf>, %2, %cst [1] : vector<8x128xf32> to vector<8xf32>
    %5 = vector.shape_cast %4 : vector<8xf32> to vector<8x1xf32>
    %6 = vector.broadcast %5 : vector<8x1xf32> to vector<8x128xf32>
    %7 = arith.cmpf oeq, %2, %6 : vector<8x128xf32>
    %c128_i32 = arith.constant 128 : i32
    %8 = vector.broadcast %c128_i32 : i32 to vector<8x128xi32>
    %9 = arith.select %7, %3, %8 : vector<8x128xi1>, vector<8x128xi32>
    %cst_3 = arith.constant dense<2147483647> : vector<8xi32>
    %10 = vector.multi_reduction <minsi>, %9, %cst_3 [1] : vector<8x128xi32> to vector<8xi32>
    %11 = vector.shape_cast %10 : vector<8xi32> to vector<8x1xi32>
    %12 = vector.broadcast %11 : vector<8x1xi32> to vector<8x128xi32>
    %13 = arith.cmpi eq, %3, %12 : vector<8x128xi32>
    %14 = arith.extui %13 : vector<8x128xi1> to vector<8x128xi32>
    %15 = arith.sitofp %14 : vector<8x128xi32> to vector<8x128xf32>
    %16 = arith.truncf %15 : vector<8x128xf32> to vector<8x128xbf16>
    %c0_4 = arith.constant 0 : index
    %c0_5 = arith.constant 0 : index
    %17 = vector.load %arg6[%c0_4, %c0_5] : memref<8x128xbf16, #tpu.memory_space<vmem>>, vector<8x128xbf16>
    tpu.vector_store %arg6[%c0_4, %c0_5], %16 {strides = array<i32>} : memref<8x128xbf16, #tpu.memory_space<vmem>>, vector<8x128xbf16>,
    %c0_6 = arith.constant 0 : index
    %c0_7 = arith.constant 0 : index
    %18 = vector.load %arg4[%c0_6, %c0_7] : memref<128x128xbf16, #tpu.memory_space<vmem>>, vector<128x128xbf16>
    %cst_8 = arith.constant dense<0.000000e+00> : vector<8x128xf32>
    %19 = tpu.matmul %16, %18, %cst_8 {dimension_numbers = #tpu.dot_dimension_numbers<[1], [0], [0], [1], [0, 0, 1, 1], [], []>} : vector<8x128xbf16>, vector<128x128xbf16>, vector<8x128xf32> -> vector<8x128xf32>
    %20 = arith.truncf %19 : vector<8x128xf32> to vector<8x128xbf16>
    %c0_9 = arith.constant 0 : index
    %c0_10 = arith.constant 0 : index
    %21 = vector.load %arg5[%c0_9, %c0_10] : memref<8x128xbf16, #tpu.memory_space<vmem>>, vector<8x128xbf16>
    tpu.vector_store %arg5[%c0_9, %c0_10], %20 {strides = array<i32>} : memref<8x128xbf16, #tpu.memory_space<vmem>>, vector<8x128xbf16>,
    return
  }
  func.func @transform_0(%arg0: i32, %arg1: i32) -> (i32, i32) {
    %c0_i32 = arith.constant 0 : i32
    %c0_i32_0 = arith.constant 0 : i32
    return %arg0, %c0_i32 : i32, i32
  }
  func.func @transform_1(%arg0: i32, %arg1: i32) -> (i32, i32) {
    %c0_i32 = arith.constant 0 : i32
    %c0_i32_0 = arith.constant 0 : i32
    return %arg0, %c0_i32 : i32, i32
  }
  func.func @transform_2(%arg0: i32, %arg1: i32) -> (i32, i32) {
    %c0_i32 = arith.constant 0 : i32
    %c0_i32_0 = arith.constant 0 : i32
    return %c0_i32, %arg1 : i32, i32
  }
  func.func @transform_3(%arg0: i32, %arg1: i32) -> (i32, i32) {
    %c0_i32 = arith.constant 0 : i32
    return %arg0, %arg1 : i32, i32
  }
  func.func @transform_4(%arg0: i32, %arg1: i32) -> (i32, i32) {
    %c0_i32 = arith.constant 0 : i32
    %c0_i32_0 = arith.constant 0 : i32
    return %arg0, %c0_i32 : i32, i32
  }
}

</mosaic_0001>

<bundles_post_ra>
// kernel: tpu_custom_call.1
= control target key start
LH: loop header
LB: loop body
LE: loop exit
PB: predicated region body
PF: predicated region fallthrough
CT: control target
= control target key end

     0   :  { %s1157_s0 = inlined_call_operand.hbm [shape: f32[16,128], index: 0, kind: input, shape index: {}]   ;;  %s1158_s1 = inlined_call_operand.hbm [shape: f32[16,128], index: 1, kind: input, shape index: {}]   ;;  %s1159_s2 = inlined_call_operand.hbm [shape: bf16[128,128], index: 2, kind: input, shape index: {}]   ;;  %s1160_s3 = inlined_call_operand.hbm [shape: bf16[16,128], index: 3, kind: output, shape index: {0}]   ;;  %s1161_s4 = inlined_call_operand.hbm [shape: bf16[16,128], index: 4, kind: output, shape index: {1}]  }
   0x1   :  { %1165 = sst [smem:[#allocation20_spill]] %s1159_s2 }
   0x2   :  { %10 = vsyncpa [#allocation3], 0 }
   0x3   :  { %12 = vsyncpa [#allocation3 + $0x1], 0 }
   0x4   :  { %13 = vsyncpa [#allocation6], 0 }
   0x5   :  { %15 = vsyncpa [#allocation6 + $0x1], 0 }
   0x6   :  { %16 = vsyncpa [#allocation4], 0 }
   0x7   :  { %18 = vsyncpa [#allocation4 + $0x1], 0 }
   0x8   :  { %19 = vsyncpa [#allocation10], 0 }
   0x9   :  { %21 = vsyncpa [#allocation10 + $0x1], 0  ;;  %s986_s15 = smov 0   ;;  %s988_s16 = smov 0  }
   0xa   :  { %s990_s17 = smov 0   ;;  %s992_s18 = smov 0  }
   0xb   :  { %s994_s19 = smov 0   ;;  %s996_s20 = smov 0  }
   0xc LB: > { %1166 = sst [smem:[#allocation16_spill]] %s942_s17  ;;  %s1017_s21 = sadd.s32 4294967295, %s954_s20   ;;  %s954_s20 = sphi %s996_s20, %s27_s20   ;;  %s950_s19 = sphi %s994_s19, %s1179_s19   ;;  %s946_s18 = sphi %s992_s18, %s1178_s18   ;;  %s942_s17 = sphi %s990_s17, %s1177_s17   ;;  %s938_s16 = sphi %s988_s16, %s1181_s16   ;;  %s934_s15 = sphi %s986_s15, %s1180_s15  }
   0xd   : > { %1167 = sst [smem:[#allocation17_spill]] %s950_s19  ;;  %p593_p0 = scmp.ge.s32.totalorder %s954_s20, 1 }
   0xe   : > { %p60_p1 = scmp.eq.s32.totalorder %s1017_s21, 0  ;;  %p176_p2 = scmp.lt.s32.totalorder %s954_s20, 3 }
   0xf   : > { %s1168_s2 = sld [smem:[#allocation20_spill]]  ;;  %s956_s26 = smov [#allocation7]  }
  0x10   : > { %p1025_p3 = pnand %p593_p0, %p176_p2  ;;  %s191_s27 = sshll.u32 %s956_s26, 4  ;;  %s192_s27 = int_to_ptr.vmem [resolvable:$true] %s191_s27 }
  0x11   : > { %p595_p6 = scmp.ge.s32.totalorder %s954_s20, 2  ;;  %s957_s28 = smov 64  }
  0x12   : > { %p667_p4 = pneg %p1025_p3  ;;  %s958_s29 = smov 4  }
  0x13   : > { %s592_s30 = sadd.s32 4294967294, %s954_s20   ;;  %s39_s5 = sadd.s32 1, %s950_s19 }
  0x14   : > { %p668_p5 = pnand %p667_p4, %p60_p1  ;;  %s46_s6 = sadd.s32 1, %s942_s17 }
  0x15   : > { %s189_s24 = sshll.u32 %s1168_s2, 4  ;;  %p41_p7 = scmp.ge.s32.totalorder %s39_s5, 2  ;;  %s190_s24 = int_to_ptr.hbm [resolvable:$true] %s189_s24 }
  0x16   : > { %670 = dma.hbm_to_vmem [thread:$0]  (!%p668_p5), %s190_s24, 1024, %s192_s27, [#allocation6], %s957_s28, %s957_s28, %s958_s29  }
  0x17   : > { %p53_p8 = scmp.ne.s32.totalorder %s942_s17, %s938_s16  ;;  %p54_p9 = scmp.eq.s32.totalorder %s954_s20, 0 }
  0x18   : > { %p59_p10 = scmp.ne.s32.totalorder %s938_s16, %s934_s15  ;;  %s1183_s5 = smov (%p41_p7, %s39_s5), 0 }
  0x19   : > { %1170 = sst [smem:[#allocation18_spill]] %s1183_s5  ;;  %p1044_p11 = por %p54_p9, %p53_p8 }
  0x1a   : > { %p1050_p12 = por %p60_p1, %p59_p10  ;;  %s43_s9 = ssub.s32 %s950_s19, %s1183_s5 }
  0x1b   : > { %p137_p13 = scmp.eq.s32.totalorder %s1017_s21, 1  ;;  %p44_p0 = scmp.eq.s32.totalorder %s43_s9, 0 }
  0x1c   : > { %p143_p2 = scmp.eq.s32.totalorder %s592_s30, 1  ;;  %p686_p5 = scmp.lt.s32.totalorder %s954_s20, 2 }
  0x1d   : > { %p1057_p4 = por %p137_p13, %p53_p8  ;;  %s205_s13 = sand.u32 1, %s942_s17  }
  0x1e   : > { %s1063_s11 = scalar_select %p44_p0, %s942_s17, %s46_s6  }
  0x1f   : > { %p1065_p7 = por %p143_p2, %p59_p10  ;;  %s596_s14 = sshll.u32 %s205_s13, 3 }
  0x20   : > { %1174 = sst [smem:[#allocation19_spill]] %s1063_s11  ;;  %s597_s22 = sshll.u32 %s950_s19, 3 }
  0x21   : > { %s213_s26 = scalar_lea.hbm %s1157_s0, %s597_s22  ;;  %s209_s27 = scalar_lea.vmem [#allocation2], %s596_s14 }
  0x22   : > { %s217_s28 = sshll.u32 %s209_s27, 4  ;;  %s215_s29 = sshll.u32 %s213_s26, 4  ;;  %s218_s28 = int_to_ptr.vmem [resolvable:$true] %s217_s28  ;;  %s216_s29 = int_to_ptr.hbm [resolvable:$true] %s215_s29 }
  0x23   : > { %p672_p8 = pnand %p686_p5, %p1044_p11  ;;  %s232_s9 = scalar_lea.hbm %s1158_s1, %s597_s22 }
  0x24   : > { %s224_s2 = sand.u32 1, %s954_s20   ;;  %s206_s5 = scalar_lea.sflag [#allocation3], %s205_s13 }
  0x25   : > { %674 = dma.hbm_to_vmem [thread:$0]  (!%p672_p8), %s216_s29, 128, %s218_s28, %s206_s5  }
  0x26   : > { %s234_s11 = sshll.u32 %s232_s9, 4  ;;  %s228_s19 = scalar_lea.vmem [#allocation5], %s596_s14  ;;  %s235_s11 = int_to_ptr.hbm [resolvable:$true] %s234_s11 }
  0x27   : > { %s236_s17 = sshll.u32 %s228_s19, 4  ;;  %s225_s23 = scalar_lea.sflag [#allocation6], %s224_s2  ;;  %s237_s17 = int_to_ptr.vmem [resolvable:$true] %s236_s17 }
  0x28   : > { %677 = dma.hbm_to_vmem [thread:$0]  (!%p672_p8), %s235_s11, 128, %s237_s17, %s225_s23  }
  0x29   : > { %245 = sbr.rel (%p1025_p3) target bundleno = 551 (0x227), region = 32  ;;  %s1083_s7 = sand.u32 (!%p1025_p3), 1, %s938_s16  }
  0x2a   : > { %s601_s22 = sshll.u32 (!%p1025_p3), %s1083_s7, 3  ;;  %s248_s24 = scalar_lea.sflag (!%p1025_p3), [#allocation3], %s1083_s7 }
  0x2b   : > { %s251_s13 = scalar_lea.vmem (!%p1025_p3), [#allocation2], %s601_s22 }
  0x2e   : > { %913 = dma.done.wait (%p1050_p12), %s248_s24, 128  }
  0x2f   : > { %915 = vsyncadd (%p1050_p12), %s248_s24, 4294967168  ;;  %s257_s2 = sand.u32 1, %s1017_s21   ;;  %s261_s19 = scalar_lea.vmem [#allocation5], %s601_s22 }
  0x30   : > { %s258_s17 = scalar_lea.sflag [#allocation6], %s257_s2 }
  0x31   : > { %917 = dma.done.wait (%p1050_p12), %s258_s17, 128  }
  0x32   : > { %919 = vsyncadd (%p1050_p12), %s258_s17, 4294967168 }
  0x33   : > { %921 = dma.done.wait (%p60_p1), [#allocation6], 1024  }
  0x34   : > { %923 = vsyncadd (%p60_p1), [#allocation6], 4294966272  ;;  %v302_v0 = vld [vmem:[%s251_s13] sm:$0xff]  ;;  %v303_v1 = vld [vmem:[%s261_s19] sm:$0xff]  ;;  %v305_v3 = vlaneseq  ;;  %s604_s21 = sshll.u32 %s1083_s7, 2  ;;  %v959_v26 = vmov 0.0  }
  0x35   : > { %v304_v2 = vadd.f32 %v303_v1, %v302_v0  ;;  %v654_v9 = vld [vmem:[#allocation7 + $0x38] sm:$0xff]  ;;  %v653_v10 = vld [vmem:[#allocation7 + $0x30] sm:$0xff]  ;;  %v652_v11 = vld [vmem:[#allocation7 + $0x28] sm:$0xff]  ;;  %v960_v29 = vmov 1.0|1.0   ;;  %s643_s25 = sshll.u32 %s946_s18, 2 }
  0x36   : > { %v306_v4 = vand.u32 127, %v305_v3  ;;  %394 = vmatpush.bf16.msra.mxu0 %v654_v9  ;;  %v651_v12 = vld [vmem:[#allocation7 + $0x20] sm:$0xff]  ;;  %v650_v13 = vld [vmem:[#allocation7 + $0x18] sm:$0xff]  ;;  %v649_v14 = vld [vmem:[#allocation7 + $0x10] sm:$0xff]  ;;  %s301_s5 = scalar_lea.vmem [#allocation9], %s604_s21  ;;  %s440_s14 = scalar_lea.hbm %s1161_s4, %s643_s25 }
  0x37   : > { %307 = vmax.xlane.f32.xlu0 %v304_v2  ;;  %v648_v15 = vld [vmem:[#allocation7 + $0x8] sm:$0xff]  ;;  %v647_v20 = vld [vmem:[#allocation7] sm:$0xff]  ;;  %s442_s26 = sshll.u32 %s301_s5, 4  ;;  %s444_s27 = sshll.u32 %s440_s14, 4  ;;  %s443_s26 = int_to_ptr.vmem [resolvable:$true] %s442_s26  ;;  %s445_s27 = int_to_ptr.hbm [resolvable:$true] %s444_s27 }
  0x38   : > { %s415_s28 = scalar_lea.sflag [#allocation10], %s1083_s7  ;;  %s846_s29 = sshra.s32 %s445_s27, 4  ;;  %s847_s29 = int_to_ptr.hbm [resolvable:$true] %s846_s29 }
  0x39   : > { %s848_s30 = scalar_lea.hbm %s847_s29, 4  ;;  %s852_s9 = scalar_lea.hbm %s1161_s4, 8 }
  0x3a   : > { %395 = vmatpush.bf16.msra.mxu0 %v653_v10  ;;  %p849_p1 = scmp.ne.s32.totalorder %s847_s29, %s848_s30  ;;  %p853_p10 = scmp.lt.s32.totalorder %s847_s29, %s1161_s4 }
  0x3b   : > { %p854_p11 = scmp.lt.s32.totalorder %s852_s9, %s848_s30 }
  0x3c   : > { %p850_p3 = pnand %p849_p1, %p1057_p4 }
  0x3d   : > { %p855_p12 = por %p854_p11, %p853_p10 }
  0x3e   : > { %396 = vmatpush.bf16.msra.mxu0 %v652_v11  ;;  %p851_p9 = pneg %p850_p3 }
  0x40   : > { %p856_p13 = pnand %p855_p12, %p851_p9 }
  0x42   : > { %397 = vmatpush.bf16.msra.mxu0 %v651_v12 }
  0x46   : > { %398 = vmatpush.bf16.msra.mxu0 %v650_v13 }
  0x4a   : > { %399 = vmatpush.bf16.msra.mxu0 %v649_v14 }
  0x4e   : > { %400 = vmatpush.bf16.msra.mxu0 %v648_v15 }
  0x52   : > { %401 = vmatpush.bf16.msra.mxu0 %v647_v20 }
  0xaa   : > { %v308_v5 = vpop.xlane.xlu0 %307 }
  0xab   : > { %vm309_vm0 = vcmp.eq.f32.partialorder %v304_v2, %v308_v5 }
  0xac   : > { %v310_v6 = vsel %vm309_vm0, %v306_v4, 128 }
  0xad   : > { %v312_v7 = vshra.s32 %v310_v6, 16  ;;  %v311_v16 = vand.u32 65535, %v310_v6 }
  0xaf   : > { %v314_v8 = vcvt.s32.f32 %v312_v7  ;;  %v313_v18 = vcvt.s32.f32 %v311_v16 }
  0xb1   : > { %315 = vmin.xlane.f32.xlu0 %v314_v8 }
 0x124   : > { %v316_v17 = vpop.xlane.xlu0 %315 }
 0x125   : > { %vm317_vm1 = vcmp.eq.f32.partialorder %v314_v8, %v316_v17  ;;  %v322_v21 = vcvt.f32.s32 %v316_v17 }
 0x126   : > { %v318_v19 = vsel %vm317_vm1, %v313_v18, inf }
 0x127   : > { %319 = vmin.xlane.f32.xlu1 %v318_v19  ;;  %v323_v23 = vshll.u32 %v322_v21, 16 }
 0x19a   : > { %v320_v22 = vpop.xlane.xlu1 %319 }
 0x19b   : > { %v321_v24 = vcvt.f32.s32 %v320_v22 }
 0x19d   : > { %v324_v25 = vadd.s32 %v323_v23, %v321_v24 }
 0x19f   : > { %vm325_vm2 = vcmp.eq.s32.totalorder %v306_v4, %v324_v25 }
 0x1a0   : > { %v606_v27 = vsel %vm325_vm2, 1.0, %v959_v26  ;;  %vm639_vm3 = vmpackc.low %vm325_vm2, %vm325_vm2 }
 0x1a1   : > { %v328_v28 = vpack.c.bf16 %v606_v27, %v606_v27  ;;  %640 = vmatmul.msk.bf16.vlgmr.msra.gmra.mxu0 %vm639_vm3, %v960_v29 }
 0x1a3   : > { %329 = vst [vmem:[%s301_s5] sm:$0xf] %v328_v28 }
 0x1a4   : > { %859 = shalt.err (!%p856_p13)
}
 0x1a5   : > { %664 = dma.vmem_to_hbm [thread:$0]  (%p1057_p4), %s443_s26, 64, %s445_s27, %s415_s28  }
 0x1a6   : > { %s426_s2 = scalar_lea.hbm %s1160_s3, %s643_s25  ;;  %s294_s17 = scalar_lea.vmem [#allocation8], %s604_s21 }
 0x1a7   : > { %s428_s19 = sshll.u32 %s294_s17, 4  ;;  %s430_s5 = sshll.u32 %s426_s2, 4  ;;  %s429_s19 = int_to_ptr.vmem [resolvable:$true] %s428_s19  ;;  %s431_s5 = int_to_ptr.hbm [resolvable:$true] %s430_s5 }
 0x1a8   : > { %s410_s8 = scalar_lea.sflag [#allocation4], %s1083_s7  ;;  %s874_s11 = sshra.s32 %s431_s5, 4  ;;  %s875_s11 = int_to_ptr.hbm [resolvable:$true] %s874_s11 }
 0x1a9   : > { %s876_s14 = scalar_lea.hbm %s875_s11, 4  ;;  %s880_s25 = scalar_lea.hbm %s1160_s3, 8 }
 0x1aa   : > { %p877_p0 = scmp.ne.s32.totalorder %s875_s11, %s876_s14  ;;  %p881_p8 = scmp.lt.s32.totalorder %s875_s11, %s1160_s3 }
 0x1ab   : > { %p882_p1 = scmp.lt.s32.totalorder %s880_s25, %s876_s14 }
 0x1ac   : > { %p878_p2 = pnand %p877_p0, %p1057_p4 }
 0x1ad   : > { %p883_p3 = por %p882_p1, %p881_p8 }
 0x1ae   : > { %p879_p5 = pneg %p878_p2 }
 0x1b0   : > { %p884_p9 = pnand %p883_p3, %p879_p5 }
 0x21e   : > { %v403_v30 = vpop.f32.mrf.mxu0 }
 0x21f   : > { %v407_v31 = vpack.c.bf16 %v403_v30, %v403_v30 }
 0x221   : > { %408 = vst [vmem:[%s294_s17] sm:$0xf] %v407_v31 }
 0x222   : > { %887 = shalt.err (!%p884_p9)
}
 0x223   : > { %663 = dma.vmem_to_hbm [thread:$0]  (%p1057_p4), %s429_s19, 64, %s431_s5, %s410_s8  }
 0x226   : > { %v405_v32 = vpop.f32.mrf.mxu0 }
 0x227 PF: > { %s456_s7 = sand.u32 1, %s934_s15   ;;  %p679_p10 = pnand %p595_p6, %p1065_p7 }
 0x228   : > { %s457_s29 = scalar_lea.sflag [#allocation4], %s456_s7 }
 0x229   : > { %p680_p11 = pneg %p679_p10 }
 0x22b   : > { %925 = dma.done.wait (%p680_p11), %s457_s29, 64  }
 0x22c   : > { %927 = vsyncadd (%p680_p11), %s457_s29, 4294967232  ;;  %s467_s30 = scalar_lea.sflag [#allocation10], %s456_s7 }
 0x22d   : > { %929 = dma.done.wait (%p680_p11), %s467_s30, 64  }
 0x22e   : > { %931 = vsyncadd (%p680_p11), %s467_s30, 4294967232  ;;  %s27_s20 = sadd.s32 1, %s954_s20   ;;  %s1176_s10 = sld [smem:[#allocation16_spill]] }
 0x22f   : > { %p24_p12 = scmp.ge.s32.totalorder %s27_s20, 4   ;;  %s1177_s17 = sld [smem:[#allocation19_spill]] }
 0x230   : > { %s1178_s18 = sld [smem:[#allocation17_spill]]  ;;  %s1180_s15 = smov %s938_s16 }
 0x231   : > { %s1179_s19 = sld [smem:[#allocation18_spill]]  ;;  %26 = sbr.rel (!%p24_p12) target bundleno = 12 (0xc), region = 112 }
 0x234   : > { %s1181_s16 = smov %s1176_s10 }
 0x236   :  { %473 = vsyncpa [#allocation3], 1 }
 0x237   :  { %475 = vsyncpa [#allocation3 + $0x1], 1 }
 0x238   :  { %476 = vsyncpa [#allocation6], 1 }
 0x239   :  { %478 = vsyncpa [#allocation6 + $0x1], 1 }
 0x23a   :  { %479 = vsyncpa [#allocation4], 1 }
 0x23b   :  { %481 = vsyncpa [#allocation4 + $0x1], 1 }
 0x23c   :  { %482 = vsyncpa [#allocation10], 1 }
 0x23d   :  { %484 = vsyncpa [#allocation10 + $0x1], 1 }

</bundles_post_ra>
